<compile_context>
chip_gen: v6e
topology: v6e:2x2x1
jax: 0.10.0
libtpu: 0.0.40
codegen_flags: <defaults>
</compile_context>

<pallas_src>
import functools

import jax
import jax.numpy as jnp
from jax import lax
from jax.experimental import pallas as pl
from jax.experimental.pallas import tpu as pltpu


def _round_up(v, m):
    return (v + m - 1) // m * m


def _choose_k_tile(H, W, max_tile_elems=2048):
    """How many image rows (KH) each contraction tile covers. tile_k = KH*W must divide H*W
    and be 128-aligned (or simply equal the full contraction)."""
    K = H * W
    if K <= max_tile_elems:
        return H, K
    for kh in range(H, 0, -1):
        tk = kh * W
        if H % kh == 0 and tk <= max_tile_elems and tk % 128 == 0:
            return kh, tk
    return H, K  # fallback: single K step (always legal — block equals full dim)


def _readout_kernel(x_ref, mu_ref, feat_ref, bias_ref, sel_ref, out_ref, acc_ref,
                    *, H, W, KH, B, C):
    """Grid = (n_tiles, k_tiles); n is 'parallel', k ('arbitrary') walks the H*W contraction.

    x_ref    : (B*C, tile_k)  feature-map slab for this K tile (bf16 or f32)
    mu_ref   : (2, tile_n)    grid coords in [-1,1] (row0 = gx / W axis, row1 = gy / H axis)
    feat_ref : (C, tile_n)    per-neuron channel weights
    bias_ref : (1, tile_n)
    sel_ref  : (B, B*C)       batch segment-sum matrix (1 where the row belongs to batch b)
    out_ref  : (B, tile_n)
    acc_ref  : (B*C, tile_n)  f32 accumulator (grid-sampled features, all channels)
    """
    k = pl.program_id(1)
    tile_n = mu_ref.shape[1]

    @pl.when(k == 0)
    def _init():
        acc_ref[...] = jnp.zeros_like(acc_ref)

    # Per-neuron pixel coordinates, align_corners=True mapping (clip matches reference).
    gx = jnp.clip(mu_ref[0:1, :], -1.0, 1.0)                  # (1, tile_n)
    gy = jnp.clip(mu_ref[1:2, :], -1.0, 1.0)
    px = (gx + 1.0) * (0.5 * (W - 1))                         # column (W / lane axis)
    py = (gy + 1.0) * (0.5 * (H - 1))                         # row    (H axis)

    # Separable bilinear "hat" weights for the KH image rows covered by this K tile
    # (no integer div/mod: two small iotas + one outer-product broadcast).
    ix = lax.broadcasted_iota(jnp.int32, (W, tile_n), 0).astype(jnp.float32)
    iy = (lax.broadcasted_iota(jnp.int32, (KH, tile_n), 0) + k * KH).astype(jnp.float32)
    wx = jnp.maximum(0.0, 1.0 - jnp.abs(ix - px))             # (W,  tile_n)
    wy = jnp.maximum(0.0, 1.0 - jnp.abs(iy - py))             # (KH, tile_n)
    wp = (wy[:, None, :] * wx[None, :, :]).reshape(KH * W, tile_n)

    # Channel-shared interpolation matmul: rows are (batch, channel) pairs -> MXU M = B*C.
    acc_ref[...] += jnp.dot(x_ref[...], wp.astype(x_ref.dtype),
                            preferred_element_type=jnp.float32)

    @pl.when(k == pl.num_programs(1) - 1)
    def _finalize():
        feat_bc = jnp.tile(feat_ref[...], (B, 1))             # (B*C, tile_n)
        weighted = acc_ref[...] * feat_bc                     # fold channel weights (VPU, f32)
        y = jnp.dot(sel_ref[...], weighted,
                    preferred_element_type=jnp.float32)       # segment-sum over channels -> (B, tile_n)
        y = y + bias_ref[...]
        out_ref[...] = jax.nn.softplus(y).astype(out_ref.dtype)


def readout_network_forward(x, mu, features, bias, *, compute_dtype=jnp.bfloat16):
    """x: (B, C, H, W); mu: (2, N) in [-1,1]; features: (C, N); bias: (N,). Returns (B, N) f32.

    compute_dtype: dtype of the MXU operands (feature map + interpolation weights).
    bf16 halves HBM traffic for x and doubles MXU rate; accumulation stays f32.
    """
    B, C, H, W = map(int, x.shape)
    N = int(features.shape[1])
    K = H * W
    M = B * C

    # Lane-dense output / weight tiles: pad N to a multiple of 128; use 256-wide tiles when
    # possible (fills the 256-wide MXU on v6e/v7x, still fine on v5e's 128-wide unit).
    N_pad = _round_up(N, 128)
    tile_n = 256 if (N_pad % 256 == 0) else 128
    KH, tile_k = _choose_k_tile(H, W)
    num_n = N_pad // tile_n
    num_k = K // tile_k

    x2d = x.reshape(M, K).astype(compute_dtype)
    mu_p = jnp.zeros((2, N_pad), jnp.float32).at[:, :N].set(mu.astype(jnp.float32))
    feat_p = jnp.zeros((C, N_pad), jnp.float32).at[:, :N].set(features.astype(jnp.float32))
    bias_p = jnp.zeros((1, N_pad), jnp.float32).at[:, :N].set(
        bias.reshape(1, N).astype(jnp.float32))
    # sel[b, m] = 1 iff row m of the (B*C)-row slab belongs to batch b.
    sel = jnp.repeat(jnp.eye(B, dtype=jnp.float32), C, axis=1)            # (B, B*C)

    kernel = functools.partial(_readout_kernel, H=H, W=W, KH=KH, B=B, C=C)
    out_pad = pl.pallas_call(
        kernel,
        out_shape=jax.ShapeDtypeStruct((B, N_pad), jnp.float32),
        grid_spec=pltpu.PrefetchScalarGridSpec(
            num_scalar_prefetch=0,
            grid=(num_n, num_k),                                # n parallel, k = reduction (last)
            in_specs=[
                pl.BlockSpec((M, tile_k), lambda n, k: (0, k)),   # x slab (streams over K)
                pl.BlockSpec((2, tile_n), lambda n, k: (0, n)),   # mu
                pl.BlockSpec((C, tile_n), lambda n, k: (0, n)),   # features
                pl.BlockSpec((1, tile_n), lambda n, k: (0, n)),   # bias
                pl.BlockSpec((B, M), lambda n, k: (0, 0)),        # batch segment matrix
            ],
            out_specs=pl.BlockSpec((B, tile_n), lambda n, k: (0, n)),
            scratch_shapes=[pltpu.VMEM((M, tile_n), jnp.float32)],
        ),
        compiler_params=pltpu.CompilerParams(
            dimension_semantics=("parallel", "arbitrary")),
    )(x2d, mu_p, feat_p, bias_p, sel)
    return out_pad[:, :N]


def _reference_forward(x, mu, features, bias):
    """Pure-JAX reference: torch-style grid_sample(align_corners=True) + feature readout."""
    B, C, H, W = x.shape
    gx = jnp.clip(mu[0], -1.0, 1.0)
    gy = jnp.clip(mu[1], -1.0, 1.0)
    px = (gx + 1.0) * 0.5 * (W - 1)
    py = (gy + 1.0) * 0.5 * (H - 1)
    x0 = jnp.floor(px).astype(jnp.int32)
    y0 = jnp.floor(py).astype(jnp.int32)
    x0c = jnp.clip(x0, 0, W - 1)
    y0c = jnp.clip(y0, 0, H - 1)
    x1c = jnp.clip(x0 + 1, 0, W - 1)
    y1c = jnp.clip(y0 + 1, 0, H - 1)
    wx1 = px - x0.astype(jnp.float32)
    wy1 = py - y0.astype(jnp.float32)
    wx0 = 1.0 - wx1
    wy0 = 1.0 - wy1
    sampled = (wy0 * wx0 * x[:, :, y0c, x0c] + wy0 * wx1 * x[:, :, y0c, x1c]
               + wy1 * wx0 * x[:, :, y1c, x0c] + wy1 * wx1 * x[:, :, y1c, x1c])  # (B, C, N)
    y = (sampled * features[None, :, :]).sum(axis=1) + bias[None, :]
    return jax.nn.softplus(y)


if __name__ == "__main__":
    B, C, H, W = 2, 4, 16, 16     # conv feature map feeding the readout
    N = 16                        # outdims (number of readout neurons)

    key = jax.random.PRNGKey(0)
    kx, kmu, kf, kb = jax.random.split(key, 4)

    x = jax.random.normal(kx, (B, C, H, W), dtype=jnp.float32)
    # init_mu_range = 0.1 -> mu ~ Uniform(-0.1, 0.1), stored as (2, N): row0 = gx, row1 = gy
    mu = jax.random.uniform(kmu, (2, N), minval=-0.1, maxval=0.1, dtype=jnp.float32)
    features = 0.1 * jax.random.normal(kf, (C, N), dtype=jnp.float32)
    bias = 0.01 * jax.random.normal(kb, (N,), dtype=jnp.float32)

    ref = _reference_forward(x, mu, features, bias)

    # f32 MXU path: tight check against the reference.
    out_f32 = jax.block_until_ready(
        readout_network_forward(x, mu, features, bias, compute_dtype=jnp.float32))
    assert out_f32.shape == (B, N)
    assert jnp.allclose(out_f32, ref, atol=1e-3, rtol=1e-3), "f32 Pallas kernel mismatch"

    # bf16 MXU path (default): looser tolerance from the bf16 operand cast.
    out_bf16 = jax.block_until_ready(readout_network_forward(x, mu, features, bias))
    assert out_bf16.shape == (B, N)
    assert jnp.allclose(out_bf16, ref, atol=2e-2, rtol=2e-2), "bf16 Pallas kernel mismatch"

    print("KERNEL_OK")
</pallas_src>

<mosaic_0001>
module attributes {stable_mosaic.version = 11 : i64} {
  func.func @_readout_kernel(%arg0: i32, %arg1: i32, %arg2: memref<8x256xf32, #tpu.memory_space<vmem>>, %arg3: memref<2x128xf32, #tpu.memory_space<vmem>>, %arg4: memref<4x128xf32, #tpu.memory_space<vmem>>, %arg5: memref<1x128xf32, #tpu.memory_space<vmem>>, %arg6: memref<2x8xf32, #tpu.memory_space<vmem>>, %arg7: memref<2x128xf32, #tpu.memory_space<vmem>>, %arg8: memref<8x128xf32, #tpu.memory_space<vmem>>) attributes {dimension_semantics = [#tpu.dimension_semantics<parallel>, #tpu.dimension_semantics<arbitrary>], iteration_bounds = array<i64: 1, 1>, scalar_prefetch = 0 : i64, scratch_operands = 1 : i64, tpu.core_type = #tpu.core_type<tc>, window_params = [{transform_indices = @transform_0, window_bounds = array<i64: 8, 256>}, {transform_indices = @transform_1, window_bounds = array<i64: 2, 128>}, {transform_indices = @transform_2, window_bounds = array<i64: 4, 128>}, {transform_indices = @transform_3, window_bounds = array<i64: 1, 128>}, {pipeline_mode = #tpu.pipeline_mode<synchronous>, transform_indices = @transform_4, window_bounds = array<i64: 2, 8>}, {transform_indices = @transform_5, window_bounds = array<i64: 2, 128>}]} {
    %c0_i32 = arith.constant 0 : i32
    %0 = arith.cmpi eq, %arg1, %c0_i32 : i32
    %1 = arith.extui %0 : i1 to i32
    %c0_i32_0 = arith.constant 0 : i32
    %2 = arith.cmpi ne, %1, %c0_i32_0 : i32
    scf.if %2 {
      %cst_23 = arith.constant 0.000000e+00 : f32
      %56 = vector.broadcast %cst_23 : f32 to vector<8x128xf32>
      %c0_24 = arith.constant 0 : index
      %c0_25 = arith.constant 0 : index
      %57 = vector.load %arg8[%c0_24, %c0_25] : memref<8x128xf32, #tpu.memory_space<vmem>>, vector<8x128xf32>
      tpu.vector_store %arg8[%c0_24, %c0_25], %56 {strides = array<i32>} : memref<8x128xf32, #tpu.memory_space<vmem>>, vector<8x128xf32>,
    } else {
    }
    %c0 = arith.constant 0 : index
    %c0_1 = arith.constant 0 : index
    %3 = vector.load %arg3[%c0, %c0_1] : memref<2x128xf32, #tpu.memory_space<vmem>>, vector<1x128xf32>
    %cst = arith.constant -1.000000e+00 : f32
    %cst_2 = arith.constant 1.000000e+00 : f32
    %4 = vector.broadcast %cst : f32 to vector<1x128xf32>
    %5 = arith.maximumf %4, %3 : vector<1x128xf32>
    %6 = vector.broadcast %cst_2 : f32 to vector<1x128xf32>
    %7 = arith.minimumf %6, %5 : vector<1x128xf32>
    %c1 = arith.constant 1 : index
    %c0_3 = arith.constant 0 : index
    %8 = vector.load %arg3[%c1, %c0_3] : memref<2x128xf32, #tpu.memory_space<vmem>>, vector<1x128xf32>
    %cst_4 = arith.constant -1.000000e+00 : f32
    %cst_5 = arith.constant 1.000000e+00 : f32
    %9 = vector.broadcast %cst_4 : f32 to vector<1x128xf32>
    %10 = arith.maximumf %9, %8 : vector<1x128xf32>
    %11 = vector.broadcast %cst_5 : f32 to vector<1x128xf32>
    %12 = arith.minimumf %11, %10 : vector<1x128xf32>
    %cst_6 = arith.constant 1.000000e+00 : f32
    %13 = vector.broadcast %cst_6 : f32 to vector<1x128xf32>
    %14 = arith.addf %7, %13 : vector<1x128xf32>
    %cst_7 = arith.constant 7.500000e+00 : f32
    %15 = vector.broadcast %cst_7 : f32 to vector<1x128xf32>
    %16 = arith.mulf %14, %15 : vector<1x128xf32>
    %cst_8 = arith.constant 1.000000e+00 : f32
    %17 = vector.broadcast %cst_8 : f32 to vector<1x128xf32>
    %18 = arith.addf %12, %17 : vector<1x128xf32>
    %cst_9 = arith.constant 7.500000e+00 : f32
    %19 = vector.broadcast %cst_9 : f32 to vector<1x128xf32>
    %20 = arith.mulf %18, %19 : vector<1x128xf32>
    %21 = tpu.iota {dimensions = array<i32: 0>} : vector<16x128xi32>
    %22 = arith.sitofp %21 : vector<16x128xi32> to vector<16x128xf32>
    %23 = tpu.iota {dimensions = array<i32: 0>} : vector<16x128xi32>
    %c16_i32 = arith.constant 16 : i32
    %24 = arith.muli %arg1, %c16_i32 : i32
    %25 = vector.broadcast %24 : i32 to vector<16x128xi32>
    %26 = arith.addi %23, %25 : vector<16x128xi32>
    %27 = arith.sitofp %26 : vector<16x128xi32> to vector<16x128xf32>
    %28 = vector.broadcast %16 : vector<1x128xf32> to vector<16x128xf32>
    %29 = arith.subf %22, %28 : vector<16x128xf32>
    %30 = math.absf %29 : vector<16x128xf32>
    %cst_10 = arith.constant 1.000000e+00 : f32
    %31 = vector.broadcast %cst_10 : f32 to vector<16x128xf32>
    %32 = arith.subf %31, %30 : vector<16x128xf32>
    %cst_11 = arith.constant 0.000000e+00 : f32
    %33 = vector.broadcast %cst_11 : f32 to vector<16x128xf32>
    %34 = arith.maximumf %33, %32 : vector<16x128xf32>
    %35 = vector.broadcast %20 : vector<1x128xf32> to vector<16x128xf32>
    %36 = arith.subf %27, %35 : vector<16x128xf32>
    %37 = math.absf %36 : vector<16x128xf32>
    %cst_12 = arith.constant 1.000000e+00 : f32
    %38 = vector.broadcast %cst_12 : f32 to vector<16x128xf32>
    %39 = arith.subf %38, %37 : vector<16x128xf32>
    %cst_13 = arith.constant 0.000000e+00 : f32
    %40 = vector.broadcast %cst_13 : f32 to vector<16x128xf32>
    %41 = arith.maximumf %40, %39 : vector<16x128xf32>
    %42 = vector.shape_cast %41 : vector<16x128xf32> to vector<16x1x128xf32>
    %43 = vector.shape_cast %34 : vector<16x128xf32> to vector<1x16x128xf32>
    %44 = vector.broadcast %42 : vector<16x1x128xf32> to vector<16x16x128xf32>
    %45 = vector.broadcast %43 : vector<1x16x128xf32> to vector<16x16x128xf32>
    %46 = arith.mulf %44, %45 : vector<16x16x128xf32>
    %47 = vector.shape_cast %46 : vector<16x16x128xf32> to vector<256x128xf32>
    %c0_14 = arith.constant 0 : index
    %c0_15 = arith.constant 0 : index
    %48 = vector.load %arg8[%c0_14, %c0_15] : memref<8x128xf32, #tpu.memory_space<vmem>>, vector<8x128xf32>
    %c0_16 = arith.constant 0 : index
    %c0_17 = arith.constant 0 : index
    %49 = vector.load %arg2[%c0_16, %c0_17] : memref<8x256xf32, #tpu.memory_space<vmem>>, vector<8x256xf32>
    %cst_18 = arith.constant dense<0.000000e+00> : vector<8x128xf32>
    %50 = tpu.matmul %49, %47, %cst_18 {dimension_numbers = #tpu.dot_dimension_numbers<[1], [0], [0], [1], [0, 0, 1, 1], [], []>} : vector<8x256xf32>, vector<256x128xf32>, vector<8x128xf32> -> vector<8x128xf32>
    %51 = arith.addf %48, %50 : vector<8x128xf32>
    %c0_19 = arith.constant 0 : index
    %c0_20 = arith.constant 0 : index
    %52 = vector.load %arg8[%c0_19, %c0_20] : memref<8x128xf32, #tpu.memory_space<vmem>>, vector<8x128xf32>
    tpu.vector_store %arg8[%c0_19, %c0_20], %51 {strides = array<i32>} : memref<8x128xf32, #tpu.memory_space<vmem>>, vector<8x128xf32>,
    %c0_i32_21 = arith.constant 0 : i32
    %53 = arith.cmpi eq, %arg1, %c0_i32_21 : i32
    %54 = arith.extui %53 : i1 to i32
    %c0_i32_22 = arith.constant 0 : i32
    %55 = arith.cmpi ne, %54, %c0_i32_22 : i32
    scf.if %55 {
      %c0_23 = arith.constant 0 : index
      %c0_24 = arith.constant 0 : index
      %56 = vector.load %arg4[%c0_23, %c0_24] : memref<4x128xf32, #tpu.memory_space<vmem>>, vector<4x128xf32>
      %57 = tpu.concatenate %56, %56 in 0 : vector<4x128xf32>, vector<4x128xf32> -> vector<8x128xf32>
      %c0_25 = arith.constant 0 : index
      %c0_26 = arith.constant 0 : index
      %58 = vector.load %arg8[%c0_25, %c0_26] : memref<8x128xf32, #tpu.memory_space<vmem>>, vector<8x128xf32>
      %59 = arith.mulf %58, %57 : vector<8x128xf32>
      %c0_27 = arith.constant 0 : index
      %c0_28 = arith.constant 0 : index
      %60 = vector.load %arg6[%c0_27, %c0_28] : memref<2x8xf32, #tpu.memory_space<vmem>>, vector<2x8xf32>
      %cst_29 = arith.constant dense<0.000000e+00> : vector<2x128xf32>
      %61 = tpu.matmul %60, %59, %cst_29 {dimension_numbers = #tpu.dot_dimension_numbers<[1], [0], [0], [1], [0, 0, 1, 1], [], []>} : vector<2x8xf32>, vector<8x128xf32>, vector<2x128xf32> -> vector<2x128xf32>
      %c0_30 = arith.constant 0 : index
      %c0_31 = arith.constant 0 : index
      %62 = vector.load %arg5[%c0_30, %c0_31] : memref<1x128xf32, #tpu.memory_space<vmem>>, vector<1x128xf32>
      %63 = vector.broadcast %62 : vector<1x128xf32> to vector<2x128xf32>
      %64 = arith.addf %61, %63 : vector<2x128xf32>
      %cst_32 = arith.constant 0.000000e+00 : f32
      %65 = vector.broadcast %cst_32 : f32 to vector<2x128xf32>
      %66 = arith.maximumf %64, %65 : vector<2x128xf32>
      %67 = vector.broadcast %cst_32 : f32 to vector<2x128xf32>
      %68 = arith.subf %64, %67 : vector<2x128xf32>
      %69 = arith.cmpf one, %68, %68 : vector<2x128xf32>
      %70 = vector.broadcast %cst_32 : f32 to vector<2x128xf32>
      %71 = arith.addf %64, %70 : vector<2x128xf32>
      %72 = math.absf %68 : vector<2x128xf32>
      %cst_33 = arith.constant 0.000000e+00 : f32
      %73 = vector.broadcast %cst_33 : f32 to vector<2x128xf32>
      %74 = arith.subf %73, %72 : vector<2x128xf32>
      %75 = math.exp %74 : vector<2x128xf32>
      %76 = math.log1p %75 : vector<2x128xf32>
      %77 = arith.addf %66, %76 : vector<2x128xf32>
      %78 = arith.select %69, %71, %77 : vector<2x128xi1>, vector<2x128xf32>
      %c0_34 = arith.constant 0 : index
      %c0_35 = arith.constant 0 : index
      %79 = vector.load %arg7[%c0_34, %c0_35] : memref<2x128xf32, #tpu.memory_space<vmem>>, vector<2x128xf32>
      tpu.vector_store %arg7[%c0_34, %c0_35], %78 {strides = array<i32>} : memref<2x128xf32, #tpu.memory_space<vmem>>, vector<2x128xf32>,
    } else {
    }
    return
  }
  func.func @transform_0(%arg0: i32, %arg1: i32) -> (i32, i32) {
    %c0_i32 = arith.constant 0 : i32
    %c0_i32_0 = arith.constant 0 : i32
    return %c0_i32, %arg1 : i32, i32
  }
  func.func @transform_1(%arg0: i32, %arg1: i32) -> (i32, i32) {
    %c0_i32 = arith.constant 0 : i32
    %c0_i32_0 = arith.constant 0 : i32
    return %c0_i32, %arg0 : i32, i32
  }
  func.func @transform_2(%arg0: i32, %arg1: i32) -> (i32, i32) {
    %c0_i32 = arith.constant 0 : i32
    %c0_i32_0 = arith.constant 0 : i32
    return %c0_i32, %arg0 : i32, i32
  }
  func.func @transform_3(%arg0: i32, %arg1: i32) -> (i32, i32) {
    %c0_i32 = arith.constant 0 : i32
    %c0_i32_0 = arith.constant 0 : i32
    return %c0_i32, %arg0 : i32, i32
  }
  func.func @transform_4(%arg0: i32, %arg1: i32) -> (i32, i32) {
    %c0_i32 = arith.constant 0 : i32
    %c0_i32_0 = arith.constant 0 : i32
    %c0_i32_1 = arith.constant 0 : i32
    return %c0_i32, %c0_i32_0 : i32, i32
  }
  func.func @transform_5(%arg0: i32, %arg1: i32) -> (i32, i32) {
    %c0_i32 = arith.constant 0 : i32
    %c0_i32_0 = arith.constant 0 : i32
    return %c0_i32, %arg0 : i32, i32
  }
}

</mosaic_0001>

<bundles_post_ra>
// kernel: tpu_custom_call.1
= control target key start
LH: loop header
LB: loop body
LE: loop exit
PB: predicated region body
PF: predicated region fallthrough
CT: control target
= control target key end

     0   :  { %10 = vsyncpa [#allocation4], 0  ;;  %s775_s0 = inlined_call_operand.hbm [shape: f32[8,256], index: 0, kind: input, shape index: {}]   ;;  %s776_s1 = inlined_call_operand.hbm [shape: f32[2,128], index: 1, kind: input, shape index: {}]   ;;  %s777_s2 = inlined_call_operand.hbm [shape: f32[4,128], index: 2, kind: input, shape index: {}]   ;;  %s778_s3 = inlined_call_operand.vmem [shape: f32[1,128], index: 3, kind: input, shape index: {}]   ;;  %s779_s4 = inlined_call_operand.vmem [shape: f32[2,8], index: 4, kind: input, shape index: {}]   ;;  %s780_s5 = inlined_call_operand.hbm [shape: f32[2,128], index: 5, kind: output, shape index: {}]  }
   0x1   :  { %11 = vsyncpa [#allocation7], 0 }
   0x2   :  { %12 = vsyncpa [#allocation5], 0  ;;  %s664_s18 = smov [#allocation6]   ;;  %s665_s20 = smov [#allocation3]  }
   0x3   :  { %s29_s19 = sshll.u32 %s664_s18, 4  ;;  %s19_s21 = sshll.u32 %s665_s20, 4  ;;  %s30_s19 = int_to_ptr.vmem [resolvable:$true] %s29_s19  ;;  %s20_s21 = int_to_ptr.vmem [resolvable:$true] %s19_s21 }
   0x4   :  { %s586_s22 = scalar_lea.vmem %s30_s19, 32  ;;  %p591_p1 = scmp.lt.s32.totalorder %s30_s19, %s30_s19 }
   0x5   :  { %p587_p0 = scmp.ne.s32.totalorder %s30_s19, %s586_s22  ;;  %p592_p2 = scmp.lt.s32.totalorder %s586_s22, %s586_s22 }
   0x7   :  { %p593_p3 = por %p592_p2, %p591_p1 }
   0x9   :  { %p594_p4 = pnand %p593_p3, %p587_p0 }
   0xb   :  { %597 = shalt.err (!%p594_p4)
}
   0xc   :  { %32 = dma.hbm_to_vmem [thread:$0]  %s776_s1, 32, %s30_s19, [#allocation7]  }
   0xd   :  { %s606_s25 = scalar_lea.vmem %s20_s21, 256  ;;  %p611_p6 = scmp.lt.s32.totalorder %s20_s21, %s20_s21 }
   0xe   :  { %p607_p5 = scmp.ne.s32.totalorder %s20_s21, %s606_s25  ;;  %p612_p7 = scmp.lt.s32.totalorder %s606_s25, %s606_s25 }
  0x10   :  { %p613_p8 = por %p612_p7, %p611_p6 }
  0x12   :  { %p614_p9 = pnand %p613_p8, %p607_p5 }
  0x14   :  { %617 = shalt.err (!%p614_p9)
}
  0x15   :  { %22 = dma.hbm_to_vmem [thread:$0]  %s775_s0, 256, %s20_s21, [#allocation4]  }
  0x16   :  { %s666_s28 = smov [#allocation8]  }
  0x17   :  { %s39_s29 = sshll.u32 %s666_s28, 4  ;;  %s40_s29 = int_to_ptr.vmem [resolvable:$true] %s39_s29 }
  0x18   :  { %s626_s30 = scalar_lea.vmem %s40_s29, 64  ;;  %p631_p11 = scmp.lt.s32.totalorder %s40_s29, %s40_s29 }
  0x19   :  { %p627_p10 = scmp.ne.s32.totalorder %s40_s29, %s626_s30  ;;  %p632_p12 = scmp.lt.s32.totalorder %s626_s30, %s626_s30 }
  0x1b   :  { %p633_p13 = por %p632_p12, %p631_p11 }
  0x1d   :  { %p634_p0 = pnand %p633_p13, %p627_p10 }
  0x1f   :  { %637 = shalt.err (!%p634_p0)
}
  0x20   :  { %42 = dma.hbm_to_vmem [thread:$0]  %s777_s2, 64, %s40_s29, [#allocation7]  }
  0x21   :  { %658 = dma.done.wait [#allocation4], 256  }
  0x22   :  { %659 = vsyncadd [#allocation4], 4294967040 }
  0x23   :  { %660 = dma.done.wait [#allocation7], 96  }
  0x24   :  { %661 = vsyncadd [#allocation7], 4294967200  ;;  %v71_v0 = vlaneseq  ;;  %v61_v2 = vld [vmem:[#allocation6] sm:$0x1]  ;;  %v64_v3 = vld [vmem:[#allocation6 + $0x1] sm:$0x1] }
  0x25   :  { %v320_v4 = vld [vmem:[#allocation3 + $0x8] sm:$0xff]  ;;  %v521_v5 = vclamps-f32 %v61_v2, 1.0  ;;  %v522_v6 = vclamps-f32 %v64_v3, 1.0  ;;  %v667_v16 = vmov 1966171168   ;;  %vm669_vm0 = vmmov 0  }
  0x26   :  { %v72_v1 = vshrl.u32 %v71_v0, 7  ;;  %385 = vmatprep.mubr.f32.mxu0 %v320_v4  ;;  %v110_v17 = vunpack.c.l.s4 %v667_v16  ;;  %vm400_vm1 = vcmask 1043456   ;;  %vm412_vm2 = vcmask 64512  }
  0x27   :  { %v67_v8 = vadd.f32 1.0, %v521_v5  ;;  %v69_v9 = vadd.f32 1.0, %v522_v6 }
  0x28   :  { %v73_v7 = vadd.s32 8, %v72_v1  ;;  %v710_v10 = vsub.s32 0, %v72_v1  ;;  %v74_v14 = vcvt.s32.f32 %v72_v1  ;;  %v111_v22 = vunpack.c.0.s8 %v110_v17 }
  0x29   :  { %v68_v11 = vmul.f32 7.5, %v67_v8  ;;  %v70_v12 = vmul.f32 7.5, %v69_v9 }
  0x2a   :  { %v75_v13 = vcvt.s32.f32 %v73_v7  ;;  %v114_v29 = vsub.s32 %v111_v22, %v72_v1 }
  0x2b   :  { %v97_v15 = vrot.slane %v70_v12, %v710_v10  ;;  %v85_v18 = vrot.slane %v68_v11, %v710_v10 }
  0x2d   :  { %v99_v19 = vsub.f32 %v75_v13, %v97_v15  ;;  %v98_v20 = vsub.f32 %v74_v14, %v97_v15  ;;  %v87_v24 = vsub.f32 %v75_v13, %v85_v18  ;;  %v86_v26 = vsub.f32 %v74_v14, %v85_v18 }
  0x2f   :  { %v101_v21 = vand.u32 2147483647, %v99_v19  ;;  %v100_v23 = vand.u32 2147483647, %v98_v20  ;;  %v89_v31 = vand.u32 2147483647, %v87_v24 }
  0x30   :  { %v88_v33 = vand.u32 2147483647, %v86_v26 }
  0x31   :  { %v103_v25 = vsub.f32 1.0, %v101_v21  ;;  %v102_v27 = vsub.f32 1.0, %v100_v23  ;;  %v91_v37 = vsub.f32 1.0, %v89_v31 }
  0x32   :  { %v90_v39 = vsub.f32 1.0, %v88_v33 }
  0x33   :  { %v105_v28 = vmax.f32 %v103_v25, 0.0  ;;  %v104_v30 = vmax.f32 %v102_v27, 0.0  ;;  %v714_v49 = vmax.f32 %v91_v37, 0.0 }
  0x34   :  { %v716_v51 = vmax.f32 %v90_v39, 0.0 }
  0x35   :  { %v157_v32 = vcombine.high %v105_v28, %v105_v28  ;;  %v108_v34 = vcombine.high %v104_v30, %v104_v30  ;;  %v164_v45 = vrot.slane %v105_v28, %v114_v29  ;;  %v115_v48 = vrot.slane %v104_v30, %v114_v29 }
  0x37   :  { %v171_v35 = vrot.slane %v157_v32, %v114_v29  ;;  %v122_v36 = vrot.slane %v108_v34, %v114_v29  ;;  %v172_v55 = vcombine.high %v164_v45, %v164_v45  ;;  %v123_v58 = vcombine.high %v115_v48, %v115_v48 }
  0x38   :  { %v180_v11 = vrot.slane %v164_v45, %v114_v29  ;;  %v131_v15 = vrot.slane %v115_v48, %v114_v29  ;;  %v668_v48 = vmov 0.0  }
  0x39   :  { %v173_v38 = vcombine.high %v171_v35, %v171_v35  ;;  %v187_v40 = vrot.slane %v171_v35, %v114_v29  ;;  %v124_v41 = vcombine.high %v122_v36, %v122_v36  ;;  %v138_v42 = vrot.slane %v122_v36, %v114_v29  ;;  %562 = vmatprep.subr.mxu1 %v668_v48 }
  0x3a   :  { %v194_v1 = vrot.slane %v172_v55, %v114_v29  ;;  %v145_v4 = vrot.slane %v123_v58, %v114_v29  ;;  %v202_v20 = vcombine.high %v180_v11, %v180_v11  ;;  %v153_v23 = vcombine.high %v131_v15, %v131_v15  ;;  %564 = vmatprep.mubr.msk.f32.mxu1 %vm669_vm0, %v668_v48 }
  0x3b   :  { %v201_v43 = vrot.slane %v173_v38, %v114_v29  ;;  %v203_v44 = vcombine.high %v187_v40, %v187_v40  ;;  %v152_v46 = vrot.slane %v124_v41, %v114_v29  ;;  %v154_v47 = vcombine.high %v138_v42, %v138_v42 }
  0x3c   :  { %v257_v8 = vrot.slane %v187_v40, %v710_v10  ;;  %v204_v9 = vcombine.high %v194_v1, %v194_v1  ;;  %v225_v13 = vrot.slane %v138_v42, %v710_v10  ;;  %v155_v14 = vcombine.high %v145_v4, %v145_v4 }
  0x3d   :  { %v205_v50 = vcombine.high %v201_v43, %v201_v43  ;;  %v156_v52 = vcombine.high %v152_v46, %v152_v46  ;;  %v265_v54 = vrot.slane %v203_v44, %v710_v10  ;;  %v233_v57 = vrot.slane %v154_v47, %v710_v10 }
  0x3e   :  { %v261_v0 = vrot.slane %v201_v43, %v710_v10  ;;  %v229_v3 = vrot.slane %v152_v46, %v710_v10  ;;  %v311_v18 = vmul.f32 %v257_v8, %v714_v49  ;;  %v253_v19 = vrot.slane %v204_v9, %v710_v10 }
  0x3f   :  { %v269_v53 = vrot.slane %v205_v50, %v710_v10  ;;  %v237_v56 = vrot.slane %v156_v52, %v710_v10  ;;  %v315_v63 = vmul.f32 %v265_v54, %v714_v49  ;;  %v299_v2 = vmul.f32 %v233_v57, %v714_v49  ;;  %v396_v50 = vld [vmem:[#allocation8] sm:$0xf] }
  0x40   :  { %v314_v5 = vmul.f32 %v265_v54, %v716_v51  ;;  %v298_v6 = vmul.f32 %v233_v57, %v716_v51  ;;  %v313_v7 = vmul.f32 %v261_v0, %v714_v49  ;;  %v297_v12 = vmul.f32 %v229_v3, %v714_v49  ;;  %v523_v57 = vld [vmem:[%s778_s3] ss:$0 sm:$0xff] }
  0x41   :  { %v317_v59 = vmul.f32 %v269_v53, %v714_v49  ;;  %v316_v60 = vmul.f32 %v269_v53, %v716_v51  ;;  %v301_v61 = vmul.f32 %v237_v56, %v714_v49  ;;  %v300_v62 = vmul.f32 %v237_v56, %v716_v51 }
  0x42   :  { %v312_v16 = vmul.f32 %v261_v0, %v716_v51  ;;  %v296_v17 = vmul.f32 %v229_v3, %v716_v51  ;;  %v295_v21 = vmul.f32 %v225_v13, %v714_v49  ;;  %v221_v22 = vrot.slane %v155_v14, %v710_v10 }
  0x43   :  { %525 = vmatprep.subr.mxu0 %v317_v59  ;;  %v310_v24 = vmul.f32 %v257_v8, %v716_v51  ;;  %v294_v25 = vmul.f32 %v225_v13, %v716_v51  ;;  %v309_v26 = vmul.f32 %v253_v19, %v714_v49  ;;  %v249_v27 = vrot.slane %v202_v20, %v710_v10 }
  0x44   :  { %526 = vmatpush3.msra.mxu0 %v301_v61  ;;  %v293_v28 = vmul.f32 %v221_v22, %v714_v49  ;;  %v217_v29 = vrot.slane %v153_v23, %v710_v10  ;;  %v308_v30 = vmul.f32 %v253_v19, %v716_v51  ;;  %v292_v31 = vmul.f32 %v221_v22, %v716_v51 }
  0x45   :  { %527 = vmatprep.subr.mxu0 %v316_v60  ;;  %v307_v32 = vmul.f32 %v249_v27, %v714_v49  ;;  %v245_v33 = vrot.slane %v194_v1, %v710_v10  ;;  %v213_v35 = vrot.slane %v145_v4, %v710_v10  ;;  %v306_v36 = vmul.f32 %v249_v27, %v716_v51 }
  0x46   :  { %528 = vmatpush3.msra.mxu0 %v300_v62  ;;  %v291_v34 = vmul.f32 %v217_v29, %v714_v49  ;;  %v290_v37 = vmul.f32 %v217_v29, %v716_v51  ;;  %v241_v39 = vrot.slane %v180_v11, %v710_v10  ;;  %v209_v41 = vrot.slane %v131_v15, %v710_v10  ;;  %v319_v10 = vld [vmem:[#allocation3] sm:$0xff] }
  0x47   :  { %529 = vmatprep.subr.mxu0 %v315_v63  ;;  %v305_v38 = vmul.f32 %v245_v33, %v714_v49  ;;  %v289_v40 = vmul.f32 %v213_v35, %v714_v49  ;;  %v304_v42 = vmul.f32 %v245_v33, %v716_v51  ;;  %v288_v43 = vmul.f32 %v213_v35, %v716_v51 }
  0x48   :  { %530 = vmatpush3.msra.mxu0 %v299_v2  ;;  %v303_v44 = vmul.f32 %v241_v39, %v714_v49  ;;  %v287_v45 = vmul.f32 %v209_v41, %v714_v49  ;;  %v302_v46 = vmul.f32 %v241_v39, %v716_v51  ;;  %v286_v47 = vmul.f32 %v209_v41, %v716_v51  ;;  %v404_v51 = vld [vmem:[%s779_s4] sm:$0x3]  ;;  %s670_s4 = smov [#allocation9]  }
  0x49   :  { %531 = vmatprep.subr.mxu0 %v314_v5  ;;  %v398_v52 = vrot.slane %v396_v50, 4  ;;  %s511_s3 = sshll.u32 %s670_s4, 4  ;;  %s512_s3 = int_to_ptr.vmem [resolvable:$true] %s511_s3 }
  0x4a   :  { %532 = vmatpush3.msra.mxu0 %v298_v6  ;;  %s638_s9 = scalar_lea.vmem %s512_s3, 32  ;;  %p643_p2 = scmp.lt.s32.totalorder %s512_s3, %s512_s3 }
  0x4b   :  { %533 = vmatprep.subr.mxu0 %v313_v7  ;;  %v401_v54 = vsel %vm400_vm1, %v396_v50, %v398_v52  ;;  %p639_p1 = scmp.ne.s32.totalorder %s512_s3, %s638_s9  ;;  %p644_p3 = scmp.lt.s32.totalorder %s638_s9, %s638_s9 }
  0x4c   :  { %534 = vmatpush3.msra.mxu0 %v297_v12 }
  0x4d   :  { %535 = vmatprep.subr.mxu0 %v312_v16  ;;  %p645_p4 = por %p644_p3, %p643_p2 }
  0x4e   :  { %536 = vmatpush3.msra.mxu0 %v296_v17 }
  0x4f   :  { %537 = vmatprep.subr.mxu0 %v311_v18  ;;  %p646_p5 = pnand %p645_p4, %p639_p1 }
  0x50   :  { %538 = vmatpush3.msra.mxu0 %v295_v21 }
  0x51   :  { %539 = vmatprep.subr.mxu0 %v310_v24 }
  0x52   :  { %540 = vmatpush3.msra.mxu0 %v294_v25 }
  0x53   :  { %541 = vmatprep.subr.mxu0 %v309_v26 }
  0x54   :  { %542 = vmatpush3.msra.mxu0 %v293_v28 }
  0x55   :  { %543 = vmatprep.subr.mxu0 %v308_v30 }
  0x56   :  { %544 = vmatpush3.msra.mxu0 %v292_v31 }
  0x57   :  { %545 = vmatprep.subr.mxu0 %v307_v32 }
  0x58   :  { %546 = vmatpush3.msra.mxu0 %v291_v34 }
  0x59   :  { %547 = vmatprep.subr.mxu0 %v306_v36 }
  0x5a   :  { %548 = vmatpush3.msra.mxu0 %v290_v37 }
  0x5b   :  { %549 = vmatprep.subr.mxu0 %v305_v38 }
  0x5c   :  { %550 = vmatpush3.msra.mxu0 %v289_v40 }
  0x5d   :  { %551 = vmatprep.subr.mxu0 %v304_v42 }
  0x5e   :  { %552 = vmatpush3.msra.mxu0 %v288_v43 }
  0x5f   :  { %553 = vmatprep.subr.mxu0 %v303_v44 }
  0x60   :  { %554 = vmatpush3.msra.mxu0 %v287_v45 }
  0x61   :  { %555 = vmatprep.subr.mxu0 %v302_v46 }
  0x62   :  { %556 = vmatpush3.msra.mxu0 %v286_v47 }
  0x63   :  { %386 = vmatmul.mubr.f32.vlgmr.msra.gmra.mxu0 %v319_v10 }
 0x123   :  { %v557_v49 = vpop.f32.mrf.mxu0 }
 0x125   :  { %v558_v53 = vpop.f32.mrf.mxu0 }
 0x126   :  { %v559_v55 = vadd.f32 %v558_v53, %v557_v49 }
 0x128   :  { %v403_v56 = vmul.f32 %v559_v55, %v401_v54 }
 0x12a   :  { %563 = vmatpush3.msra.mxu1 %v403_v56 }
 0x12b   :  { %565 = vmatmul.mubr.msk.f32.vlgmr.msra.gmra.mxu1 %vm412_vm2, %v404_v51 }
 0x1eb   :  { %v482_v58 = vpop.f32.mrf.mxu1 }
 0x1ec   :  { %v483_v59 = vadd.f32 %v523_v57, %v482_v58 }
 0x1ed   :  { %v566_v60 = vpop.f32.mrf.mxu1 }
 0x1ee   :  { %v489_v61 = vand.u32 2147483647, %v483_v59  ;;  %v486_v8 = vmax.f32 %v483_v59, 0.0  ;;  %vm487_vm4 = vcmp.ne.f32.partialorder %v483_v59, %v483_v59 }
 0x1f0   :  { %v490_v62 = vsub.f32 0.0, %v489_v61 }
 0x1f2   :  { %v491_v63 = vmul.f32 1.442695, %v490_v62 }
 0x1f4   :  { %574 = vpow2.f32 %v491_v63 }
 0x201   :  { %v575_v0 = vpop.eup %574 }
 0x202   :  { %v493_v1 = vadd.f32 1.0, %v575_v0  ;;  %v496_v2 = vmul.f32 -0.5, %v575_v0  ;;  %v499_v4 = vand.u32 2147483647, %v575_v0 }
 0x204   :  { %576 = vlog2.f32 %v493_v1  ;;  %v497_v3 = vadd.f32 1.0, %v496_v2  ;;  %vm500_vm3 = vcmp.lt.f32.partialorder %v499_v4, 0.0004427343 }
 0x206   :  { %v498_v7 = vmul.f32 %v575_v0, %v497_v3 }
 0x211   :  { %v577_v5 = vpop.eup %576 }
 0x212   :  { %v495_v6 = vmul.f32 0.6931472, %v577_v5 }
 0x214   :  { %v501_v9 = vsel %vm500_vm3, %v498_v7, %v495_v6 }
 0x215   :  { %v502_v11 = vadd.f32 %v501_v9, %v486_v8 }
 0x217   :  { %v503_v12 = vsel %vm487_vm4, %v483_v59, %v502_v11 }
 0x218   :  { %504 = vst [vmem:[#allocation9] sm:$0x3] %v503_v12 }
 0x219   :  { %649 = shalt.err (!%p646_p5)
}
 0x21a   :  { %514 = dma.vmem_to_hbm [thread:$0]  %s512_s3, 32, %s780_s5, [#allocation5]  }
 0x21b   :  { %662 = dma.done.wait [#allocation5], 32  }
 0x21c   :  { %663 = vsyncadd [#allocation5], 4294967264 }
 0x21d   :  { %518 = vsyncpa [#allocation4], 1 }
 0x21e   :  { %519 = vsyncpa [#allocation7], 1 }
 0x21f   :  { %520 = vsyncpa [#allocation5], 1 }

</bundles_post_ra>
